<compile_context>
chip_gen: v5e
topology: v5e:2x2
jax: 0.10.0
libtpu: 0.0.40
codegen_flags: <defaults>
</compile_context>

<pallas_src>
import functools

import jax
import jax.numpy as jnp
from jax.experimental import pallas as pl
from jax.experimental.pallas import tpu as pltpu


def neumiss_kernel(xT_ref, mT_ref, mu_ref, wT_ref, beta_ref, b_ref, coefs_ref,
                   o_ref, *, depth):
    # Per grid step:
    #   xT_ref, mT_ref : (F, TB)   batch on the lane axis
    #   mu_ref, beta_ref : (F, 1)
    #   wT_ref : (F, F)            W^T, so (h @ W)^T == W^T @ h^T
    #   b_ref : (1,), coefs_ref : (depth+1,)   -- SMEM scalars
    #   o_ref : (1, TB)            lane-dense output slab
    obs = 1.0 - mT_ref[...]                               # (F, TB)
    g = (xT_ref[...] - obs * mu_ref[...]) * coefs_ref[0]  # (F, TB)
    wT = wT_ref[...]                                      # (F, F)

    # Neumann iterations, statically unrolled (depth is a Python int).
    for _ in range(depth):
        g = jnp.dot(wT, g, preferred_element_type=jnp.float32) * obs

    # Final projection y^T = beta . h^T : VPU multiply + sublane reduce
    # instead of a degenerate N=1 matmul.
    y = jnp.sum(g * beta_ref[...], axis=0, keepdims=True)  # (1, TB)
    o_ref[...] = y + b_ref[0]


def neumiss_forward(x, m, params, depth, block_b=512):
    B, F = x.shape
    n_blocks = pl.cdiv(B, block_b)
    B_pad = n_blocks * block_b
    if B_pad != B:
        pad = ((0, B_pad - B), (0, 0))
        x = jnp.pad(x, pad)
        m = jnp.pad(m, pad)

    # Transposed problem: batch on the lane axis.
    xT = jnp.transpose(x).astype(jnp.float32)              # (F, B_pad)
    mT = jnp.transpose(m).astype(jnp.float32)              # (F, B_pad)
    mu_col = params["mu"].reshape(F, 1).astype(jnp.float32)
    beta_col = params["beta"].reshape(F, 1).astype(jnp.float32)
    WT = jnp.transpose(params["W"]).astype(jnp.float32)    # (F, F)
    b = params["b"].reshape(1).astype(jnp.float32)
    coefs = params["coefs"].reshape(depth + 1).astype(jnp.float32)

    # Advisory cost estimate for XLA's scheduler.
    flops = 2 * B_pad * F * F * depth + 6 * B_pad * F
    bytes_accessed = 4 * (2 * B_pad * F + F * F + 2 * F + depth + 2 + B_pad)

    # Rough VMEM budget: x/m double-buffered, W double-buffered, small extras.
    est_vmem = 4 * (2 * 2 * F * block_b + 2 * F * F + 4 * F + 2 * block_b)
    vmem_limit = int(max(32 * 1024 * 1024,
                         min(2 * est_vmem, 64 * 1024 * 1024)))

    kernel = functools.partial(neumiss_kernel, depth=depth)
    yT = pl.pallas_call(
        kernel,
        out_shape=jax.ShapeDtypeStruct((1, B_pad), jnp.float32),
        grid=(n_blocks,),
        in_specs=[
            pl.BlockSpec((F, block_b), lambda i: (0, i)),        # x^T (stream)
            pl.BlockSpec((F, block_b), lambda i: (0, i)),        # m^T (stream)
            pl.BlockSpec((F, 1), lambda i: (0, 0)),              # mu (invariant)
            pl.BlockSpec((F, F), lambda i: (0, 0)),              # W^T (invariant)
            pl.BlockSpec((F, 1), lambda i: (0, 0)),              # beta (invariant)
            pl.BlockSpec(memory_space=pltpu.MemorySpace.SMEM),   # b
            pl.BlockSpec(memory_space=pltpu.MemorySpace.SMEM),   # coefs
        ],
        out_specs=pl.BlockSpec((1, block_b), lambda i: (0, i)),  # lane-dense
        compiler_params=pltpu.CompilerParams(
            dimension_semantics=("parallel",),
            vmem_limit_bytes=vmem_limit),
        cost_estimate=pl.CostEstimate(
            flops=flops, transcendentals=0, bytes_accessed=bytes_accessed),
    )(xT, mT, mu_col, WT, beta_col, b, coefs)
    return yT[0, :B]


def neumiss_reference(x, m, params, depth):
    """Pure-JAX reference matching the PyTorch forward."""
    obs = 1.0 - m
    h = x - obs * params["mu"][None, :]
    h = h * params["coefs"][0]
    for _ in range(depth):
        h = (h @ params["W"]) * obs
    return h @ params["beta"] + params["b"][0]


def init_params(key, in_features, depth):
    """Deterministic parameter init mirroring NeuMiss.__init__ shapes."""
    kW, kWc, kmu, kbeta, kb = jax.random.split(key, 5)
    xavier_std = (2.0 / (in_features + in_features)) ** 0.5
    return {
        "W": xavier_std * jax.random.normal(kW, (in_features, in_features),
                                            jnp.float32),
        # Wc is initialized in the PyTorch module but never used in forward.
        "Wc": xavier_std * jax.random.normal(kWc, (in_features, in_features),
                                             jnp.float32),
        "mu": jax.random.normal(kmu, (in_features,), jnp.float32),
        "beta": jax.random.normal(kbeta, (in_features,), jnp.float32),
        "b": jax.random.normal(kb, (1,), jnp.float32),
        "coefs": jnp.ones((depth + 1,), jnp.float32),
    }


if __name__ == "__main__":
    B, F, DEPTH = 8, 16, 3
    key = jax.random.PRNGKey(0)
    kparam, kx, km = jax.random.split(key, 3)

    params = init_params(kparam, F, DEPTH)
    m = jax.random.bernoulli(km, 0.3, (B, F)).astype(jnp.float32)
    x_full = jax.random.normal(kx, (B, F), jnp.float32)
    x = x_full * (1.0 - m)   # "input data imputed by 0"

    y = neumiss_forward(x, m, params, DEPTH)
    y = jax.block_until_ready(y)

    y_ref = neumiss_reference(x, m, params, DEPTH)
    assert y.shape == (B,)
    assert jnp.allclose(y, y_ref, atol=1e-4, rtol=1e-4), (y, y_ref)

    print("KERNEL_OK")
</pallas_src>

<mosaic_0001>
module attributes {stable_mosaic.version = 11 : i64} {
  func.func @neumiss_kernel(%arg0: i32, %arg1: memref<16x512xf32, #tpu.memory_space<vmem>>, %arg2: memref<16x512xf32, #tpu.memory_space<vmem>>, %arg3: memref<16x1xf32, #tpu.memory_space<vmem>>, %arg4: memref<16x16xf32, #tpu.memory_space<vmem>>, %arg5: memref<16x1xf32, #tpu.memory_space<vmem>>, %arg6: memref<1xf32, #tpu.memory_space<smem>>, %arg7: memref<4xf32, #tpu.memory_space<smem>>, %arg8: memref<1x512xf32, #tpu.memory_space<vmem>>) attributes {dimension_semantics = [#tpu.dimension_semantics<parallel>], iteration_bounds = array<i64: 1>, scalar_prefetch = 0 : i64, scratch_operands = 0 : i64, tpu.core_type = #tpu.core_type<tc>, window_params = [{transform_indices = @transform_0, window_bounds = array<i64: 16, 512>}, {transform_indices = @transform_1, window_bounds = array<i64: 16, 512>}, {pipeline_mode = #tpu.pipeline_mode<synchronous>, transform_indices = @transform_2, window_bounds = array<i64: 16, 1>}, {pipeline_mode = #tpu.pipeline_mode<synchronous>, transform_indices = @transform_3, window_bounds = array<i64: 16, 16>}, {pipeline_mode = #tpu.pipeline_mode<synchronous>, transform_indices = @transform_4, window_bounds = array<i64: 16, 1>}, {transform_indices = @transform_5, window_bounds = array<i64: 1>}, {transform_indices = @transform_6, window_bounds = array<i64: 4>}, {transform_indices = @transform_7, window_bounds = array<i64: 1, 512>}]} {
    %c0 = arith.constant 0 : index
    %c0_0 = arith.constant 0 : index
    %0 = vector.load %arg2[%c0, %c0_0] : memref<16x512xf32, #tpu.memory_space<vmem>>, vector<16x512xf32>
    %cst = arith.constant 1.000000e+00 : f32
    %1 = vector.broadcast %cst : f32 to vector<16x512xf32>
    %2 = arith.subf %1, %0 : vector<16x512xf32>
    %c0_1 = arith.constant 0 : index
    %c0_2 = arith.constant 0 : index
    %3 = vector.load %arg1[%c0_1, %c0_2] : memref<16x512xf32, #tpu.memory_space<vmem>>, vector<16x512xf32>
    %c0_3 = arith.constant 0 : index
    %c0_4 = arith.constant 0 : index
    %4 = vector.load %arg3[%c0_3, %c0_4] : memref<16x1xf32, #tpu.memory_space<vmem>>, vector<16x1xf32>
    %5 = vector.broadcast %4 : vector<16x1xf32> to vector<16x512xf32>
    %6 = arith.mulf %2, %5 : vector<16x512xf32>
    %7 = arith.subf %3, %6 : vector<16x512xf32>
    %c0_5 = arith.constant 0 : index
    %8 = memref.load %arg7[%c0_5] : memref<4xf32, #tpu.memory_space<smem>>
    %9 = vector.broadcast %8 : f32 to vector<16x512xf32>
    %10 = arith.mulf %7, %9 : vector<16x512xf32>
    %c0_6 = arith.constant 0 : index
    %c0_7 = arith.constant 0 : index
    %11 = vector.load %arg4[%c0_6, %c0_7] : memref<16x16xf32, #tpu.memory_space<vmem>>, vector<16x16xf32>
    %cst_8 = arith.constant dense<0.000000e+00> : vector<16x512xf32>
    %12 = tpu.matmul %11, %10, %cst_8 {dimension_numbers = #tpu.dot_dimension_numbers<[1], [0], [0], [1], [0, 0, 1, 1], [], []>} : vector<16x16xf32>, vector<16x512xf32>, vector<16x512xf32> -> vector<16x512xf32>
    %13 = arith.mulf %12, %2 : vector<16x512xf32>
    %cst_9 = arith.constant dense<0.000000e+00> : vector<16x512xf32>
    %14 = tpu.matmul %11, %13, %cst_9 {dimension_numbers = #tpu.dot_dimension_numbers<[1], [0], [0], [1], [0, 0, 1, 1], [], []>} : vector<16x16xf32>, vector<16x512xf32>, vector<16x512xf32> -> vector<16x512xf32>
    %15 = arith.mulf %14, %2 : vector<16x512xf32>
    %cst_10 = arith.constant dense<0.000000e+00> : vector<16x512xf32>
    %16 = tpu.matmul %11, %15, %cst_10 {dimension_numbers = #tpu.dot_dimension_numbers<[1], [0], [0], [1], [0, 0, 1, 1], [], []>} : vector<16x16xf32>, vector<16x512xf32>, vector<16x512xf32> -> vector<16x512xf32>
    %17 = arith.mulf %16, %2 : vector<16x512xf32>
    %c0_11 = arith.constant 0 : index
    %c0_12 = arith.constant 0 : index
    %18 = vector.load %arg5[%c0_11, %c0_12] : memref<16x1xf32, #tpu.memory_space<vmem>>, vector<16x1xf32>
    %19 = vector.broadcast %18 : vector<16x1xf32> to vector<16x512xf32>
    %20 = arith.mulf %17, %19 : vector<16x512xf32>
    %cst_13 = arith.constant dense<0.000000e+00> : vector<512xf32>
    %21 = vector.multi_reduction <add>, %20, %cst_13 [0] : vector<16x512xf32> to vector<512xf32>
    %22 = vector.shape_cast %21 : vector<512xf32> to vector<1x512xf32>
    %c0_14 = arith.constant 0 : index
    %23 = memref.load %arg6[%c0_14] : memref<1xf32, #tpu.memory_space<smem>>
    %24 = vector.broadcast %23 : f32 to vector<1x512xf32>
    %25 = arith.addf %22, %24 : vector<1x512xf32>
    %c0_15 = arith.constant 0 : index
    %c0_16 = arith.constant 0 : index
    %26 = vector.load %arg8[%c0_15, %c0_16] : memref<1x512xf32, #tpu.memory_space<vmem>>, vector<1x512xf32>
    tpu.vector_store %arg8[%c0_15, %c0_16], %25 {strides = array<i32>} : memref<1x512xf32, #tpu.memory_space<vmem>>, vector<1x512xf32>,
    return
  }
  func.func @transform_0(%arg0: i32) -> (i32, i32) {
    %c0_i32 = arith.constant 0 : i32
    %c0_i32_0 = arith.constant 0 : i32
    return %c0_i32, %arg0 : i32, i32
  }
  func.func @transform_1(%arg0: i32) -> (i32, i32) {
    %c0_i32 = arith.constant 0 : i32
    %c0_i32_0 = arith.constant 0 : i32
    return %c0_i32, %arg0 : i32, i32
  }
  func.func @transform_2(%arg0: i32) -> (i32, i32) {
    %c0_i32 = arith.constant 0 : i32
    %c0_i32_0 = arith.constant 0 : i32
    %c0_i32_1 = arith.constant 0 : i32
    return %c0_i32, %c0_i32_0 : i32, i32
  }
  func.func @transform_3(%arg0: i32) -> (i32, i32) {
    %c0_i32 = arith.constant 0 : i32
    %c0_i32_0 = arith.constant 0 : i32
    %c0_i32_1 = arith.constant 0 : i32
    return %c0_i32, %c0_i32_0 : i32, i32
  }
  func.func @transform_4(%arg0: i32) -> (i32, i32) {
    %c0_i32 = arith.constant 0 : i32
    %c0_i32_0 = arith.constant 0 : i32
    %c0_i32_1 = arith.constant 0 : i32
    return %c0_i32, %c0_i32_0 : i32, i32
  }
  func.func @transform_5(%arg0: i32) -> i32 {
    %c0_i32 = arith.constant 0 : i32
    %c0_i32_0 = arith.constant 0 : i32
    return %c0_i32 : i32
  }
  func.func @transform_6(%arg0: i32) -> i32 {
    %c0_i32 = arith.constant 0 : i32
    %c0_i32_0 = arith.constant 0 : i32
    return %c0_i32 : i32
  }
  func.func @transform_7(%arg0: i32) -> (i32, i32) {
    %c0_i32 = arith.constant 0 : i32
    %c0_i32_0 = arith.constant 0 : i32
    return %c0_i32, %arg0 : i32, i32
  }
}

</mosaic_0001>

<bundles_post_ra>
// kernel: tpu_custom_call.1
= control target key start
LH: loop header
LB: loop body
LE: loop exit
PB: predicated region body
PF: predicated region fallthrough
CT: control target
= control target key end

     0   :  { %13 = vsyncpa [#allocation4], 0  ;;  %s841_s0 = inlined_call_operand.hbm [shape: f32[16,512], index: 0, kind: input, shape index: {}]   ;;  %s842_s1 = inlined_call_operand.hbm [shape: f32[16,512], index: 1, kind: input, shape index: {}]   ;;  %s843_s2 = inlined_call_operand.vmem [shape: f32[16,1], index: 2, kind: input, shape index: {}]   ;;  %s844_s3 = inlined_call_operand.vmem [shape: f32[16,16], index: 3, kind: input, shape index: {}]   ;;  %s845_s4 = inlined_call_operand.vmem [shape: f32[16,1], index: 4, kind: input, shape index: {}]   ;;  %s846_s5 = inlined_call_operand.<no memory space> [shape: f32[1], index: 5, kind: input, shape index: {}]   ;;  %s847_s6 = inlined_call_operand.vmem [shape: f32[4], index: 6, kind: input, shape index: {}]   ;;  %s848_s7 = inlined_call_operand.hbm [shape: f32[1,512], index: 7, kind: output, shape index: {}]  }
   0x1   :  { %14 = vsyncpa [#allocation8], 0 }
   0x2   :  { %15 = vsyncpa [#allocation6], 0 }
   0x3   :  { %16 = vsyncpa [#allocation5], 0  ;;  %s21_s26 = sshll.u32 %s841_s0, 4  ;;  %s661_s27 = smov [#allocation3]   ;;  %s22_s26 = int_to_ptr.hbm [resolvable:$true] %s21_s26 }
   0x4   :  { %s23_s28 = sshll.u32 %s661_s27, 4  ;;  %s34_s8 = sshll.u32 %s842_s1, 4  ;;  %s24_s28 = int_to_ptr.vmem [resolvable:$true] %s23_s28  ;;  %s35_s8 = int_to_ptr.hbm [resolvable:$true] %s34_s8 }
   0x5   :  { %s662_s9 = smov 512   ;;  %s663_s10 = smov 32  }
   0x6   :  { %29 = dma.hbm_to_vmem [thread:$0]  %s22_s26, 1024, %s24_s28, [#allocation4], %s662_s9, %s662_s9, %s663_s10  }
   0x7   :  { %s664_s11 = smov [#allocation7]   ;;  %s56_s15 = sshll.u32 %s847_s6, 4  ;;  %s57_s15 = int_to_ptr.vmem [resolvable:$true] %s56_s15 }
   0x8   :  { %s36_s12 = sshll.u32 %s664_s11, 4  ;;  %s665_s0 = smov [#allocation9]   ;;  %s37_s12 = int_to_ptr.vmem [resolvable:$true] %s36_s12 }
   0x9   :  { %42 = dma.hbm_to_vmem [thread:$0]  %s35_s8, 1024, %s37_s12, [#allocation8], %s662_s9, %s662_s9, %s663_s10  }
   0xa   :  { %59 = dma.vmem_to_smem %s57_s15, 16, %s665_s0, [#allocation6]  }
   0xb   :  { %653 = dma.done.wait [#allocation4], 1024  }
   0xc   :  { %654 = vsyncadd [#allocation4], 4294966272 }
   0xd   :  { %655 = dma.done.wait [#allocation8], 1024  }
   0xe   :  { %656 = vsyncadd [#allocation8], 4294966272 }
   0xf   :  { %657 = dma.done.wait [#allocation6], 16  }
  0x10   :  { %658 = vsyncadd [#allocation6], 4294967280 }
  0x11   :  { %72 = sfence }
  0x12   :  { %v98_v0 = vld [vmem:[%s843_s2 + $0x8] sm:$0xff]  ;;  %v666_v1 = vmov 0   ;;  %v97_v2 = vld [vmem:[%s843_s2] sm:$0xff]  ;;  %s125_s18 = sld [smem:[#allocation9]]  ;;  %v79_v5 = vld [vmem:[#allocation7 + $0x30] sm:$0xff]  ;;  %vm137_vm0 = vcmask 130048  }
  0x13   :  { %567 = vset.pattern.permute.xlu0 %v666_v1  ;;  %568 = vset.pattern.permute.xlu1 %v666_v1  ;;  %v77_v3 = vld [vmem:[#allocation7 + $0x20] sm:$0xff]  ;;  %v78_v4 = vld [vmem:[#allocation7 + $0x28] sm:$0xff]  ;;  %v80_v6 = vld [vmem:[#allocation7 + $0x38] sm:$0xff]  ;;  %v727_v9 = vsub.f32 1.0, %v79_v5  ;;  %vm505_vm1 = vcmask 1040384   ;;  %vm507_vm2 = vcmask 1042434  }
  0x14   :  { %106 = vperm.xlu0 %567, %v98_v0   ;;  %v723_v7 = vsub.f32 1.0, %v77_v3  ;;  %v725_v8 = vsub.f32 1.0, %v78_v4  ;;  %v729_v10 = vsub.f32 1.0, %v80_v6  ;;  %v93_v11 = vld [vmem:[#allocation3 + $0x20] sm:$0xff]  ;;  %v94_v12 = vld [vmem:[#allocation3 + $0x28] sm:$0xff]  ;;  %v95_v14 = vld [vmem:[#allocation3 + $0x30] sm:$0xff] }
  0x15   :  { %v96_v15 = vld [vmem:[#allocation3 + $0x38] sm:$0xff]  ;;  %v73_v16 = vld [vmem:[#allocation7] sm:$0xff]  ;;  %v74_v21 = vld [vmem:[#allocation7 + $0x8] sm:$0xff]  ;;  %s667_s26 = smov [#allocation10]   ;;  %vm509_vm3 = vcmask 1041408  }
  0x16   :  { %v75_v22 = vld [vmem:[#allocation7 + $0x10] sm:$0xff]  ;;  %v76_v23 = vld [vmem:[#allocation7 + $0x18] sm:$0xff]  ;;  %v735_v29 = vsub.f32 1.0, %v73_v16  ;;  %v737_v30 = vsub.f32 1.0, %v74_v21  ;;  %v89_v37 = vld [vmem:[#allocation3] sm:$0xff]  ;;  %s522_s27 = sshll.u32 %s667_s26, 4  ;;  %s523_s27 = int_to_ptr.vmem [resolvable:$true] %s522_s27 }
  0x17   :  { %v739_v31 = vsub.f32 1.0, %v75_v22  ;;  %v741_v32 = vsub.f32 1.0, %v76_v23  ;;  %v90_v39 = vld [vmem:[#allocation3 + $0x8] sm:$0xff]  ;;  %v91_v40 = vld [vmem:[#allocation3 + $0x10] sm:$0xff]  ;;  %v92_v41 = vld [vmem:[#allocation3 + $0x18] sm:$0xff] }
  0x18   :  { %v126_v24 = vstv %s125_s18  ;;  %v750_v54 = vld [vmem:[%s844_s3] sm:$0xff]  ;;  %v763_v55 = vld [vmem:[%s844_s3 + $0x8] sm:$0xff] }
  0x1c   :  { %101 = vperm.xlu0 %567, %v97_v2  }
  0x86   :  { %v107_v13 = vpop.permute.xlu0 %106 }
  0x87   :  { %v113_v17 = vmul.f32 %v107_v13, %v723_v7  ;;  %v114_v18 = vmul.f32 %v107_v13, %v725_v8  ;;  %v115_v19 = vmul.f32 %v107_v13, %v727_v9  ;;  %v116_v20 = vmul.f32 %v107_v13, %v729_v10 }
  0x89   :  { %v121_v25 = vsub.f32 %v93_v11, %v113_v17  ;;  %v122_v26 = vsub.f32 %v94_v12, %v114_v18  ;;  %v123_v27 = vsub.f32 %v95_v14, %v115_v19  ;;  %v124_v28 = vsub.f32 %v96_v15, %v116_v20  ;;  %v444_v12 = vld [vmem:[%s845_s4] sm:$0xff]  ;;  %v445_v15 = vld [vmem:[%s845_s4 + $0x8] sm:$0xff] }
  0x8a   :  { %448 = vperm.xlu1 %568, %v444_v12  }
  0x8b   :  { %v131_v33 = vmul.f32 %v126_v24, %v121_v25  ;;  %v132_v34 = vmul.f32 %v126_v24, %v122_v26  ;;  %v133_v35 = vmul.f32 %v126_v24, %v123_v27  ;;  %v134_v36 = vmul.f32 %v126_v24, %v124_v28 }
  0x8d   :  { %158 = vmatpush.msra.mxu0 %v131_v33  ;;  %181 = vmatpush.msra.mxu1 %v132_v34 }
  0x8e   :  { %204 = vmatpush.msra.mxu2 %v133_v35  ;;  %227 = vmatpush.msra.mxu3 %v134_v36  ;;  %v102_v38 = vpop.permute.xlu0 %101 }
  0x8f   :  { %v109_v42 = vmul.f32 %v102_v38, %v735_v29  ;;  %v110_v43 = vmul.f32 %v102_v38, %v737_v30  ;;  %v111_v44 = vmul.f32 %v102_v38, %v739_v31  ;;  %v112_v45 = vmul.f32 %v102_v38, %v741_v32 }
  0x91   :  { %v117_v46 = vsub.f32 %v89_v37, %v109_v42  ;;  %v118_v47 = vsub.f32 %v90_v39, %v110_v43  ;;  %v119_v48 = vsub.f32 %v91_v40, %v111_v44  ;;  %v120_v49 = vsub.f32 %v92_v41, %v112_v45 }
  0x92   :  { %453 = vperm.xlu1 %568, %v445_v15  }
  0x93   :  { %v127_v50 = vmul.f32 %v126_v24, %v117_v46  ;;  %v128_v51 = vmul.f32 %v126_v24, %v118_v47  ;;  %v129_v52 = vmul.f32 %v126_v24, %v119_v48  ;;  %v130_v53 = vmul.f32 %v126_v24, %v120_v49 }
  0x95   :  { %159 = vmatpush.msra.mxu0 %v127_v50  ;;  %182 = vmatpush.msra.mxu1 %v128_v51 }
  0x96   :  { %205 = vmatpush.msra.mxu2 %v129_v52  ;;  %228 = vmatpush.msra.mxu3 %v130_v53 }
  0x97   :  { %540 = vmatmul.msk.f32.vlgmr.msra.gmra.mxu2 %vm137_vm0, %v750_v54  ;;  %542 = vmatmul.msk.f32.vlgmr.msra.gmra.mxu3 %vm137_vm0, %v750_v54 }
  0x98   :  { %538 = vmatmul.msk.f32.vlgmr.msra.gmra.mxu1 %vm137_vm0, %v750_v54  ;;  %536 = vmatmul.msk.f32.vlgmr.msra.gmra.mxu0 %vm137_vm0, %v750_v54 }
  0x9f   :  { %541 = vmatmul.msk.f32.gmra.mxu2 %vm137_vm0, %v763_v55  ;;  %543 = vmatmul.msk.f32.gmra.mxu3 %vm137_vm0, %v763_v55 }
  0xa0   :  { %539 = vmatmul.msk.f32.gmra.mxu1 %vm137_vm0, %v763_v55  ;;  %537 = vmatmul.msk.f32.gmra.mxu0 %vm137_vm0, %v763_v55 }
  0xfc   :  { %v449_v34 = vpop.permute.xlu1 %448 }
 0x104   :  { %v454_v39 = vpop.permute.xlu1 %453 }
 0x115   :  { %v184_v56 = vpop.f32.mrf.mxu1  ;;  %v161_v57 = vpop.f32.mrf.mxu0 }
 0x116   :  { %v237_v62 = vmul.f32 %v184_v56, %v737_v30  ;;  %v236_v63 = vmul.f32 %v161_v57, %v735_v29 }
 0x11a   :  { %v207_v58 = vpop.f32.mrf.mxu2  ;;  %v230_v59 = vpop.f32.mrf.mxu3 }
 0x11b   :  { %v238_v6 = vmul.f32 %v207_v58, %v739_v31  ;;  %v239_v11 = vmul.f32 %v230_v59, %v741_v32 }
 0x11d   :  { %v187_v60 = vpop.f32.mrf.mxu1  ;;  %v164_v61 = vpop.f32.mrf.mxu0 }
 0x11e   :  { %v241_v0 = vmul.f32 %v187_v60, %v725_v8  ;;  %v240_v1 = vmul.f32 %v164_v61, %v723_v7 }
 0x120   :  { %281 = vmatpush.msrb.mxu1 %v241_v0  ;;  %258 = vmatpush.msrb.mxu0 %v240_v1 }
 0x122   :  { %v210_v2 = vpop.f32.mrf.mxu2  ;;  %v233_v3 = vpop.f32.mrf.mxu3  ;;  %282 = vmatpush.msrb.mxu1 %v237_v62  ;;  %259 = vmatpush.msrb.mxu0 %v236_v63 }
 0x123   :  { %v242_v4 = vmul.f32 %v210_v2, %v727_v9  ;;  %v243_v5 = vmul.f32 %v233_v3, %v729_v10  ;;  %546 = vmatmul.msk.f32.vlgmr.msrb.gmra.mxu1 %vm137_vm0, %v750_v54  ;;  %544 = vmatmul.msk.f32.vlgmr.msrb.gmra.mxu0 %vm137_vm0, %v750_v54 }
 0x125   :  { %304 = vmatpush.msrb.mxu2 %v242_v4  ;;  %327 = vmatpush.msrb.mxu3 %v243_v5 }
 0x127   :  { %305 = vmatpush.msrb.mxu2 %v238_v6  ;;  %328 = vmatpush.msrb.mxu3 %v239_v11 }
 0x128   :  { %548 = vmatmul.msk.f32.vlgmr.msrb.gmra.mxu2 %vm137_vm0, %v750_v54  ;;  %550 = vmatmul.msk.f32.vlgmr.msrb.gmra.mxu3 %vm137_vm0, %v750_v54 }
 0x12b   :  { %547 = vmatmul.msk.f32.gmra.mxu1 %vm137_vm0, %v763_v55  ;;  %545 = vmatmul.msk.f32.gmra.mxu0 %vm137_vm0, %v763_v55 }
 0x130   :  { %549 = vmatmul.msk.f32.gmra.mxu2 %vm137_vm0, %v763_v55  ;;  %551 = vmatmul.msk.f32.gmra.mxu3 %vm137_vm0, %v763_v55 }
 0x1a0   :  { %v284_v13 = vpop.f32.mrf.mxu1  ;;  %v261_v14 = vpop.f32.mrf.mxu0 }
 0x1a1   :  { %v337_v18 = vmul.f32 %v284_v13, %v737_v30  ;;  %v336_v19 = vmul.f32 %v261_v14, %v735_v29 }
 0x1a8   :  { %v287_v16 = vpop.f32.mrf.mxu1  ;;  %v264_v17 = vpop.f32.mrf.mxu0 }
 0x1a9   :  { %v341_v20 = vmul.f32 %v287_v16, %v725_v8  ;;  %v340_v21 = vmul.f32 %v264_v17, %v723_v7 }
 0x1ab   :  { %v307_v22 = vpop.f32.mrf.mxu2  ;;  %v330_v23 = vpop.f32.mrf.mxu3  ;;  %381 = vmatpush.msra.mxu1 %v341_v20  ;;  %358 = vmatpush.msra.mxu0 %v340_v21 }
 0x1ac   :  { %v338_v28 = vmul.f32 %v307_v22, %v739_v31  ;;  %v339_v33 = vmul.f32 %v330_v23, %v741_v32  ;;  %v512_v22 = vlaneseq }
 0x1ad   :  { %382 = vmatpush.msra.mxu1 %v337_v18  ;;  %359 = vmatpush.msra.mxu0 %v336_v19 }
 0x1ae   :  { %554 = vmatmul.msk.f32.vlgmr.msra.gmra.mxu1 %vm137_vm0, %v750_v54  ;;  %552 = vmatmul.msk.f32.vlgmr.msra.gmra.mxu0 %vm137_vm0, %v750_v54  ;;  %vm514_vm4 = vcmp.lt.s32.totalorder %v512_v22, 512 }
 0x1b3   :  { %v310_v24 = vpop.f32.mrf.mxu2  ;;  %v333_v25 = vpop.f32.mrf.mxu3 }
 0x1b4   :  { %v342_v26 = vmul.f32 %v310_v24, %v727_v9  ;;  %v343_v27 = vmul.f32 %v333_v25, %v729_v10 }
 0x1b6   :  { %404 = vmatpush.msra.mxu2 %v342_v26  ;;  %427 = vmatpush.msra.mxu3 %v343_v27 }
 0x1b7   :  { %555 = vmatmul.msk.f32.gmra.mxu1 %vm137_vm0, %v763_v55  ;;  %553 = vmatmul.msk.f32.gmra.mxu0 %vm137_vm0, %v763_v55 }
 0x1b8   :  { %405 = vmatpush.msra.mxu2 %v338_v28  ;;  %428 = vmatpush.msra.mxu3 %v339_v33 }
 0x1b9   :  { %556 = vmatmul.msk.f32.vlgmr.msra.gmra.mxu2 %vm137_vm0, %v750_v54  ;;  %558 = vmatmul.msk.f32.vlgmr.msra.gmra.mxu3 %vm137_vm0, %v750_v54 }
 0x1c1   :  { %557 = vmatmul.msk.f32.gmra.mxu2 %vm137_vm0, %v763_v55  ;;  %559 = vmatmul.msk.f32.gmra.mxu3 %vm137_vm0, %v763_v55 }
 0x22b   :  { %v384_v35 = vpop.f32.mrf.mxu1  ;;  %v361_v36 = vpop.f32.mrf.mxu0 }
 0x22c   :  { %v437_v37 = vmul.f32 %v384_v35, %v737_v30  ;;  %v436_v38 = vmul.f32 %v361_v36, %v735_v29 }
 0x22e   :  { %v457_v42 = vmul.f32 %v449_v34, %v437_v37  ;;  %v456_v45 = vmul.f32 %v449_v34, %v436_v38 }
 0x234   :  { %v387_v40 = vpop.f32.mrf.mxu1  ;;  %v364_v41 = vpop.f32.mrf.mxu0 }
 0x235   :  { %v441_v43 = vmul.f32 %v387_v40, %v725_v8  ;;  %v440_v44 = vmul.f32 %v364_v41, %v723_v7 }
 0x237   :  { %v461_v46 = vmul.f32 %v454_v39, %v441_v43  ;;  %v460_v47 = vmul.f32 %v454_v39, %v440_v44 }
 0x239   :  { %v471_v48 = vadd.f32 %v461_v46, %v457_v42  ;;  %v464_v50 = vadd.f32 %v460_v47, %v456_v45 }
 0x23b   :  { %v472_v49 = vrot.slane %v471_v48, 4  ;;  %v465_v30 = vrot.slane %v464_v50, 4 }
 0x23c   :  { %v407_v51 = vpop.f32.mrf.mxu2  ;;  %v430_v52 = vpop.f32.mrf.mxu3 }
 0x23d   :  { %v473_v53 = vadd.f32 %v472_v49, %v471_v48  ;;  %v438_v29 = vmul.f32 %v407_v51, %v739_v31  ;;  %v439_v54 = vmul.f32 %v430_v52, %v741_v32  ;;  %v466_v56 = vadd.f32 %v465_v30, %v464_v50 }
 0x23f   :  { %v474_v55 = vrot.slane %v473_v53, 2  ;;  %v458_v59 = vmul.f32 %v449_v34, %v438_v29  ;;  %v459_v60 = vmul.f32 %v449_v34, %v439_v54  ;;  %v467_v62 = vrot.slane %v466_v56, 2 }
 0x241   :  { %v475_v61 = vadd.f32 %v474_v55, %v473_v53  ;;  %v468_v31 = vadd.f32 %v467_v62, %v466_v56 }
 0x243   :  { %v476_v3 = vrot.slane %v475_v61, 1  ;;  %v469_v12 = vrot.slane %v468_v31, 1 }
 0x244   :  { %v410_v57 = vpop.f32.mrf.mxu2  ;;  %v433_v8 = vpop.f32.mrf.mxu3 }
 0x245   :  { %v442_v7 = vmul.f32 %v410_v57, %v727_v9  ;;  %v443_v58 = vmul.f32 %v433_v8, %v729_v10  ;;  %v477_v11 = vadd.f32 %v476_v3, %v475_v61  ;;  %v493_v10 = vstv %s846_s5  ;;  %s524_s5 = sshll.u32 %s848_s7, 4  ;;  %s525_s5 = int_to_ptr.hbm [resolvable:$true] %s524_s5 }
 0x246   :  { %v470_v16 = vadd.f32 %v469_v12, %v468_v31 }
 0x247   :  { %v462_v63 = vmul.f32 %v454_v39, %v442_v7  ;;  %v463_v0 = vmul.f32 %v454_v39, %v443_v58  ;;  %v495_v19 = vadd.f32 %v493_v10, %v477_v11 }
 0x248   :  { %v494_v23 = vadd.f32 %v493_v10, %v470_v16 }
 0x249   :  { %v478_v1 = vadd.f32 %v462_v63, %v458_v59  ;;  %v485_v2 = vadd.f32 %v463_v0, %v459_v60  ;;  %v502_v26 = vrot.slane %v495_v19, 7 }
 0x24b   :  { %v479_v4 = vrot.slane %v478_v1, 4  ;;  %v486_v32 = vrot.slane %v485_v2, 4  ;;  %v506_v33 = vsel %vm505_vm1, %v494_v23, %v502_v26 }
 0x24d   :  { %v480_v5 = vadd.f32 %v479_v4, %v478_v1  ;;  %v487_v6 = vadd.f32 %v486_v32, %v485_v2 }
 0x24f   :  { %v481_v13 = vrot.slane %v480_v5, 2  ;;  %v488_v9 = vrot.slane %v487_v6, 2 }
 0x251   :  { %v482_v14 = vadd.f32 %v481_v13, %v480_v5  ;;  %v489_v15 = vadd.f32 %v488_v9, %v487_v6 }
 0x253   :  { %v483_v17 = vrot.slane %v482_v14, 1  ;;  %v490_v18 = vrot.slane %v489_v15, 1 }
 0x255   :  { %v484_v20 = vadd.f32 %v483_v17, %v482_v14  ;;  %v491_v21 = vadd.f32 %v490_v18, %v489_v15 }
 0x257   :  { %v496_v24 = vadd.f32 %v493_v10, %v484_v20  ;;  %v497_v25 = vadd.f32 %v493_v10, %v491_v21 }
 0x259   :  { %v503_v27 = vrot.slane %v496_v24, 6  ;;  %v504_v28 = vrot.slane %v497_v25, 5 }
 0x25b   :  { %v508_v34 = vsel %vm507_vm2, %v503_v27, %v504_v28 }
 0x25c   :  { %v510_v35 = vsel %vm509_vm3, %v506_v33, %v508_v34 }
 0x25d   :  { %516 = vst.msk [vmem:[#allocation10] sm:$0xf] %vm514_vm4, %v510_v35 }
 0x25e   :  { %527 = dma.vmem_to_hbm [thread:$0]  %s523_s27, 64, %s525_s5, [#allocation5]  }
 0x25f   :  { %659 = dma.done.wait [#allocation5], 64  }
 0x260   :  { %660 = vsyncadd [#allocation5], 4294967232 }
 0x261   :  { %532 = vsyncpa [#allocation4], 1 }
 0x262   :  { %533 = vsyncpa [#allocation8], 1 }
 0x263   :  { %534 = vsyncpa [#allocation5], 1 }
 0x264   :  { %535 = vsyncpa [#allocation6], 1 }

</bundles_post_ra>
